<compile_context>
chip_gen: v7x
topology: tpu7x:2x2x1
jax: 0.10.0
libtpu: 0.0.40
codegen_flags: <defaults>
</compile_context>

<pallas_src>
import numpy as np
import jax
import jax.numpy as jnp
from jax.experimental import pallas as pl
from jax.experimental.pallas import tpu as pltpu


def _round_up(x, m):
    return ((x + m - 1) // m) * m


def _pad2d(a, rows, cols):
    a = a.astype(jnp.float32)
    return jnp.pad(a, ((0, rows - a.shape[0]), (0, cols - a.shape[1])))


def make_dawe_kernel(*, num_experts: int, hidden: int, out_dim: int,
                     Ec: int, Hc: int, batch: int):
    E, H, O = num_experts, hidden, out_dim
    # Row layout of the coalesced bias pack.
    R_BF, R_BG1, R_BG2, R_B1, R_B2 = 0, 1, 2, 3, 4
    R_TVB1, R_TVB2 = 5, 5 + E

    def kernel(x_ref, w1all_ref, w2all_ref, gatew_ref, biases_ref,
               out_ref, codings_ref, acc_ref):
        k = pl.program_id(0)

        @pl.when(k == 0)
        def _init():
            acc_ref[...] = jnp.zeros_like(acc_ref)

        # One fused MXU matmul per K step (bf16 operands, f32 accumulation):
        #   acc[:, 0:H]             += x_blk @ Wf_blk          (dict feature extractor)
        #   acc[:, H:2H]            += x_blk @ base_W1_blk     (base model layer 1)
        #   acc[:, (2+e)H:(3+e)H]   += x_blk @ tv_W1[e]_blk    (task-vector contraction)
        acc_ref[...] += jnp.dot(x_ref[...], w1all_ref[...],
                                preferred_element_type=jnp.float32)

        @pl.when(k == pl.num_programs(0) - 1)
        def _finalize():
            # ---- gate: Depth_2_Gate on frozen dict features (tiny, f32) ----
            feats = acc_ref[:, 0:H] + biases_ref[R_BF:R_BF + 1, 0:H]
            h = jnp.maximum(
                jnp.dot(feats, gatew_ref[:, 0:H],
                        preferred_element_type=jnp.float32)
                + biases_ref[R_BG1:R_BG1 + 1, 0:H], 0.0)
            codings = (jnp.dot(h, gatew_ref[:, Hc:Hc + Ec],
                               preferred_element_type=jnp.float32)
                       + biases_ref[R_BG2:R_BG2 + 1, 0:Ec])      # (Bp, Ec) lane-dense
            codings_ref[...] = codings

            # ---- batch_reduce=True: mean over the REAL batch rows only ----
            row_ids = jax.lax.broadcasted_iota(jnp.int32, codings.shape, 0)
            mask = (row_ids < batch).astype(jnp.float32)
            c = jnp.sum(codings * mask, axis=0, keepdims=True) * (1.0 / batch)  # (1, Ec)

            # ---- task_wise merge, layer 1: contraction already on MXU; cheap
            #      c-weighted epilogue over ref slices (one segment live at a time) ----
            h_pre = acc_ref[:, H:2 * H] + biases_ref[R_B1:R_B1 + 1, 0:H]
            # TODO(synk): for E >= 16 replace the unrolled combines with a reshaped
            #             (Bp, E, H) weighted sum / fori_loop to bound live ranges.
            for e in range(E):
                ce = c[:, e:e + 1]
                h_pre = h_pre + ce * (acc_ref[:, (2 + e) * H:(3 + e) * H]
                                      + biases_ref[R_TVB1 + e:R_TVB1 + e + 1, 0:H])
            hh = jnp.maximum(h_pre, 0.0)

            # ---- merged layer 2: base_W2 + all tv_W2 in one compact packed MXU matmul ----
            t2 = jnp.dot(hh.astype(jnp.bfloat16), w2all_ref[...],
                         preferred_element_type=jnp.float32)      # (Bp, N2p)
            y = t2[:, 0:O] + biases_ref[R_B2:R_B2 + 1, 0:O]
            for e in range(E):
                ce = c[:, e:e + 1]
                y = y + ce * (t2[:, (1 + e) * O:(2 + e) * O]
                              + biases_ref[R_TVB2 + e:R_TVB2 + e + 1, 0:O])
            out_ref[:, 0:O] = y          # rest of the lane-dense block is sliced off outside

    return kernel


def dawe_forward(x_nchw, params, *, block_k=1024):
    """Full DAWE forward on a batch of NCHW images via one pipelined pallas_call.

    block_k tuning: >=2048 on v7x (per-step overhead rivals DMA at 3.2 TB/s),
    1024-2048 on v6e, 512-1024 on v5e.
    """
    B = x_nchw.shape[0]
    D = int(np.prod(x_nchw.shape[1:]))
    x_flat = x_nchw.reshape(B, D).astype(jnp.float32)   # dict_/model_processor (flatten)

    E = params["tv_w1"].shape[0]
    hidden = params["base_w1"].shape[1]
    out_dim = params["base_w2"].shape[1]

    # ---- padded sizes ----
    Bp = _round_up(max(B, 16), 16)       # bf16 packs 2 rows/sublane -> full (16,128) tiles
    Ec = _round_up(E, 128)               # lane-dense codings output
    Oc = _round_up(out_dim, 128)         # lane-dense model output block
    Hc = _round_up(hidden, 128)          # lane-aligned wg2 offset inside the gate pack

    # K tiling: pad D only to 128, then pick the largest block <= block_k that tiles Dp
    # exactly -> no nearly-empty extra K block when D is just past a block boundary.
    Dp128 = _round_up(D, 128)
    nk = max(1, -(-Dp128 // block_k))
    bk = _round_up(-(-Dp128 // nk), 128)
    Dp = nk * bk

    # Compact packed widths: real segment widths, only the TOTAL padded to 128.
    n1 = (E + 2) * hidden
    N1p = _round_up(n1, 128)             # e.g. 4 experts, hidden 32: 192 -> 256
    n2 = (E + 1) * out_dim
    N2p = _round_up(n2, 128)             # e.g. 50 -> 128

    bf16 = jnp.bfloat16

    # ---- big streaming operands: pad rows to Dp, compact-pack columns, cast to bf16 ----
    x_p = _pad2d(x_flat, Bp, Dp).astype(bf16)                                   # (Bp, Dp)

    wf_p = _pad2d(params["wf"], Dp, hidden)                                     # (Dp, H)
    bw1_p = _pad2d(params["base_w1"], Dp, hidden)                               # (Dp, H)
    tvw1 = jnp.pad(params["tv_w1"].astype(jnp.float32),
                   ((0, 0), (0, Dp - D), (0, 0)))                               # (E, Dp, H)
    tvw1_flat = jnp.transpose(tvw1, (1, 0, 2)).reshape(Dp, E * hidden)
    w1_all = jnp.concatenate([wf_p, bw1_p, tvw1_flat], axis=1)                  # (Dp, n1)
    w1_all = jnp.pad(w1_all, ((0, 0), (0, N1p - n1))).astype(bf16)              # (Dp, N1p)

    bw2 = params["base_w2"].astype(jnp.float32)                                 # (H, O)
    tvw2_flat = jnp.transpose(params["tv_w2"].astype(jnp.float32),
                              (1, 0, 2)).reshape(hidden, E * out_dim)
    w2_all = jnp.concatenate([bw2, tvw2_flat], axis=1)                          # (H, n2)
    w2_all = jnp.pad(w2_all, ((0, 0), (0, N2p - n2))).astype(bf16)              # (H, N2p)

    # ---- small resident operands, coalesced into 2 f32 arrays ----
    # gate weights pack: [ wg1 (padded to Hc cols) | wg2 (padded to Ec cols) ]
    gatew = jnp.concatenate([_pad2d(params["wg1"], hidden, Hc),
                             _pad2d(params["wg2"], hidden, Ec)], axis=1)        # (H, Hc+Ec)

    # bias pack: rows = [bf, bg1, bg2, b1, b2, tvb1[0..E), tvb2[0..E)]
    Wb = max(Hc, Ec, Oc)
    nrows = 5 + 2 * E
    Rb = _round_up(nrows, 8)
    biases = jnp.concatenate([
        _pad2d(params["bf"], 1, Wb),
        _pad2d(params["bg1"], 1, Wb),
        _pad2d(params["bg2"], 1, Wb),
        _pad2d(params["base_b1"], 1, Wb),
        _pad2d(params["base_b2"], 1, Wb),
        _pad2d(params["tv_b1"], E, Wb),
        _pad2d(params["tv_b2"], E, Wb),
    ], axis=0)
    biases = jnp.pad(biases, ((0, Rb - nrows), (0, 0)))                         # (Rb, Wb)

    kernel = make_dawe_kernel(num_experts=E, hidden=hidden, out_dim=out_dim,
                              Ec=Ec, Hc=Hc, batch=B)

    # ---- explicit VMEM budget (double-buffered streams + residents + acc + outputs) ----
    stream_bytes = 2 * (Bp * bk + bk * N1p) * 2                 # 2 bufs x bf16 streams
    resident_bytes = 2 * (w2_all.size * 2 + gatew.size * 4 + biases.size * 4)
    out_bytes = 2 * (Bp * Oc + Bp * Ec) * 4
    acc_bytes = Bp * N1p * 4
    budget = int(1.25 * (stream_bytes + resident_bytes + out_bytes + acc_bytes))
    vmem_limit = min(56 * 1024 * 1024, max(32 * 1024 * 1024, budget))

    out, codings = pl.pallas_call(
        kernel,
        out_shape=(
            jax.ShapeDtypeStruct((Bp, Oc), jnp.float32),   # model output (lane-dense block)
            jax.ShapeDtypeStruct((Bp, Ec), jnp.float32),   # dict_codings (lane-dense block)
        ),
        grid=(nk,),
        in_specs=[
            pl.BlockSpec((Bp, bk), lambda k: (0, k)),      # x: streamed over D
            pl.BlockSpec((bk, N1p), lambda k: (k, 0)),     # compact packed W1: streamed over D
            pl.BlockSpec(w2_all.shape, lambda k: (0, 0)),  # compact packed W2 (resident)
            pl.BlockSpec(gatew.shape, lambda k: (0, 0)),   # gate weight pack (resident)
            pl.BlockSpec(biases.shape, lambda k: (0, 0)),  # bias pack (resident)
        ],
        out_specs=(
            pl.BlockSpec((Bp, Oc), lambda k: (0, 0)),
            pl.BlockSpec((Bp, Ec), lambda k: (0, 0)),
        ),
        scratch_shapes=[pltpu.VMEM((Bp, N1p), jnp.float32)],   # f32 accumulator
        compiler_params=pltpu.CompilerParams(
            dimension_semantics=("arbitrary",),            # K is a reduction axis
            vmem_limit_bytes=vmem_limit,
        ),
    )(x_p, w1_all, w2_all, gatew, biases)

    return out[:B, :out_dim], codings[:B, :E]


def dawe_reference(x_nchw, params):
    """Pure-JAX f32 reference with identical semantics."""
    B = x_nchw.shape[0]
    x = x_nchw.reshape(B, -1)
    feats = x @ params["wf"] + params["bf"]
    h = jax.nn.relu(feats @ params["wg1"] + params["bg1"])
    codings = h @ params["wg2"] + params["bg2"]
    c = codings.mean(axis=0)                                    # (E,)
    w1 = params["base_w1"] + jnp.einsum("e,edh->dh", c, params["tv_w1"])
    b1 = params["base_b1"] + jnp.einsum("e,eh->h", c, params["tv_b1"])[None, :]
    w2 = params["base_w2"] + jnp.einsum("e,eho->ho", c, params["tv_w2"])
    b2 = params["base_b2"] + jnp.einsum("e,eo->o", c, params["tv_b2"])[None, :]
    y = jax.nn.relu(x @ w1 + b1) @ w2 + b2
    return y, codings


def build_params(key, *, D, hidden, num_experts, out_dim, init_lambda=0.2):
    ks = jax.random.split(key, 12)
    # frozen dict_feature_extractor
    wf = 0.02 * jax.random.normal(ks[0], (D, hidden), jnp.float32)
    bf = jnp.zeros((1, hidden), jnp.float32)
    # Depth_2_Gate.init_weight(init_lambda)
    wg1 = 0.01 * jax.random.normal(ks[1], (hidden, hidden), jnp.float32)
    bg1 = jnp.zeros((1, hidden), jnp.float32)
    wg2 = 0.01 * jax.random.normal(ks[2], (hidden, num_experts), jnp.float32)
    bg2 = jnp.full((1, num_experts), init_lambda, jnp.float32)
    # base model (Linear -> ReLU -> Linear)
    base_w1 = 0.02 * jax.random.normal(ks[3], (D, hidden), jnp.float32)
    base_b1 = 0.02 * jax.random.normal(ks[4], (1, hidden), jnp.float32)
    base_w2 = 0.02 * jax.random.normal(ks[5], (hidden, out_dim), jnp.float32)
    base_b2 = 0.02 * jax.random.normal(ks[6], (1, out_dim), jnp.float32)
    # expert models -> task vectors = expert - base (mirrors __init__)
    exp_w1 = 0.02 * jax.random.normal(ks[7], (num_experts, D, hidden), jnp.float32)
    exp_b1 = 0.02 * jax.random.normal(ks[8], (num_experts, hidden), jnp.float32)
    exp_w2 = 0.02 * jax.random.normal(ks[9], (num_experts, hidden, out_dim), jnp.float32)
    exp_b2 = 0.02 * jax.random.normal(ks[10], (num_experts, out_dim), jnp.float32)
    tv_w1 = exp_w1 - base_w1[None]
    tv_b1 = exp_b1 - base_b1
    tv_w2 = exp_w2 - base_w2[None]
    tv_b2 = exp_b2 - base_b2
    # TODO(synk): task_vector_sparsity / to_sparse() (torch sparse CSR weights) has no clean
    #             Pallas equivalent; task vectors are kept dense (bf16-cast in the wrapper).
    return dict(
        wf=wf, bf=bf, wg1=wg1, bg1=bg1, wg2=wg2, bg2=bg2,
        base_w1=base_w1, base_b1=base_b1, base_w2=base_w2, base_b2=base_b2,
        tv_w1=tv_w1, tv_b1=tv_b1, tv_w2=tv_w2, tv_b2=tv_b2,
    )


if __name__ == "__main__":
    B, C, H, W = 2, 4, 16, 16
    hidden = 32
    num_experts = 4
    out_dim = 10
    D = C * H * W

    key = jax.random.PRNGKey(0)
    k_x, k_p = jax.random.split(key)
    x = jax.random.normal(k_x, (B, C, H, W), jnp.float32)   # NCHW, flattened inside wrapper
    params = build_params(k_p, D=D, hidden=hidden, num_experts=num_experts,
                          out_dim=out_dim, init_lambda=0.2)

    # block_k=256 at toy size to exercise a multi-step K-reduction grid (nk=4).
    out, codings = dawe_forward(x, params, block_k=256)
    out = jax.block_until_ready(out)
    codings = jax.block_until_ready(codings)

    ref_out, ref_codings = dawe_reference(x, params)
    # bf16 streaming of x / W1 / W2 (f32 accumulation) -> slightly looser tolerance on y.
    np.testing.assert_allclose(np.asarray(codings), np.asarray(ref_codings), rtol=2e-2, atol=2e-3)
    np.testing.assert_allclose(np.asarray(out), np.asarray(ref_out), rtol=2e-2, atol=8e-3)

    print("KERNEL_OK")
</pallas_src>

<mosaic_0001>
module attributes {stable_mosaic.version = 11 : i64} {
  func.func @kernel(%arg0: i32, %arg1: memref<16x256xbf16, #tpu.memory_space<vmem>>, %arg2: memref<256x256xbf16, #tpu.memory_space<vmem>>, %arg3: memref<32x128xbf16, #tpu.memory_space<vmem>>, %arg4: memref<32x256xf32, #tpu.memory_space<vmem>>, %arg5: memref<16x128xf32, #tpu.memory_space<vmem>>, %arg6: memref<16x128xf32, #tpu.memory_space<vmem>>, %arg7: memref<16x128xf32, #tpu.memory_space<vmem>>, %arg8: memref<16x256xf32, #tpu.memory_space<vmem>>) attributes {dimension_semantics = [#tpu.dimension_semantics<arbitrary>], iteration_bounds = array<i64: 4>, scalar_prefetch = 0 : i64, scratch_operands = 1 : i64, tpu.core_type = #tpu.core_type<tc>, window_params = [{transform_indices = @transform_0, window_bounds = array<i64: 16, 256>}, {transform_indices = @transform_1, window_bounds = array<i64: 256, 256>}, {pipeline_mode = #tpu.pipeline_mode<synchronous>, transform_indices = @transform_2, window_bounds = array<i64: 32, 128>}, {pipeline_mode = #tpu.pipeline_mode<synchronous>, transform_indices = @transform_3, window_bounds = array<i64: 32, 256>}, {pipeline_mode = #tpu.pipeline_mode<synchronous>, transform_indices = @transform_4, window_bounds = array<i64: 16, 128>}, {pipeline_mode = #tpu.pipeline_mode<synchronous>, transform_indices = @transform_5, window_bounds = array<i64: 16, 128>}, {pipeline_mode = #tpu.pipeline_mode<synchronous>, transform_indices = @transform_6, window_bounds = array<i64: 16, 128>}]} {
    %c0_i32 = arith.constant 0 : i32
    %0 = arith.cmpi eq, %arg0, %c0_i32 : i32
    %1 = arith.extui %0 : i1 to i32
    %c0_i32_0 = arith.constant 0 : i32
    %2 = arith.cmpi ne, %1, %c0_i32_0 : i32
    scf.if %2 {
      %cst_9 = arith.constant 0.000000e+00 : f32
      %12 = vector.broadcast %cst_9 : f32 to vector<16x256xf32>
      %c0_10 = arith.constant 0 : index
      %c0_11 = arith.constant 0 : index
      %13 = vector.load %arg8[%c0_10, %c0_11] : memref<16x256xf32, #tpu.memory_space<vmem>>, vector<16x256xf32>
      tpu.vector_store %arg8[%c0_10, %c0_11], %12 {strides = array<i32>} : memref<16x256xf32, #tpu.memory_space<vmem>>, vector<16x256xf32>,
    } else {
    }
    %c0 = arith.constant 0 : index
    %c0_1 = arith.constant 0 : index
    %3 = vector.load %arg8[%c0, %c0_1] : memref<16x256xf32, #tpu.memory_space<vmem>>, vector<16x256xf32>
    %c0_2 = arith.constant 0 : index
    %c0_3 = arith.constant 0 : index
    %4 = vector.load %arg1[%c0_2, %c0_3] : memref<16x256xbf16, #tpu.memory_space<vmem>>, vector<16x256xbf16>
    %c0_4 = arith.constant 0 : index
    %c0_5 = arith.constant 0 : index
    %5 = vector.load %arg2[%c0_4, %c0_5] : memref<256x256xbf16, #tpu.memory_space<vmem>>, vector<256x256xbf16>
    %cst = arith.constant dense<0.000000e+00> : vector<16x256xf32>
    %6 = tpu.matmul %4, %5, %cst {dimension_numbers = #tpu.dot_dimension_numbers<[1], [0], [0], [1], [0, 0, 1, 1], [], []>} : vector<16x256xbf16>, vector<256x256xbf16>, vector<16x256xf32> -> vector<16x256xf32>
    %7 = arith.addf %3, %6 : vector<16x256xf32>
    %c0_6 = arith.constant 0 : index
    %c0_7 = arith.constant 0 : index
    %8 = vector.load %arg8[%c0_6, %c0_7] : memref<16x256xf32, #tpu.memory_space<vmem>>, vector<16x256xf32>
    tpu.vector_store %arg8[%c0_6, %c0_7], %7 {strides = array<i32>} : memref<16x256xf32, #tpu.memory_space<vmem>>, vector<16x256xf32>,
    %c3_i32 = arith.constant 3 : i32
    %9 = arith.cmpi eq, %arg0, %c3_i32 : i32
    %10 = arith.extui %9 : i1 to i32
    %c0_i32_8 = arith.constant 0 : i32
    %11 = arith.cmpi ne, %10, %c0_i32_8 : i32
    scf.if %11 {
      %c0_9 = arith.constant 0 : index
      %c0_10 = arith.constant 0 : index
      %12 = vector.load %arg8[%c0_9, %c0_10] : memref<16x256xf32, #tpu.memory_space<vmem>>, vector<16x32xf32>
      %c0_11 = arith.constant 0 : index
      %c0_12 = arith.constant 0 : index
      %13 = vector.load %arg5[%c0_11, %c0_12] : memref<16x128xf32, #tpu.memory_space<vmem>>, vector<1x32xf32>
      %14 = vector.broadcast %13 : vector<1x32xf32> to vector<16x32xf32>
      %15 = arith.addf %12, %14 : vector<16x32xf32>
      %c0_13 = arith.constant 0 : index
      %c0_14 = arith.constant 0 : index
      %16 = vector.load %arg4[%c0_13, %c0_14] : memref<32x256xf32, #tpu.memory_space<vmem>>, vector<32x32xf32>
      %cst_15 = arith.constant dense<0.000000e+00> : vector<16x32xf32>
      %17 = tpu.matmul %15, %16, %cst_15 {dimension_numbers = #tpu.dot_dimension_numbers<[1], [0], [0], [1], [0, 0, 1, 1], [], []>} : vector<16x32xf32>, vector<32x32xf32>, vector<16x32xf32> -> vector<16x32xf32>
      %c1 = arith.constant 1 : index
      %c0_16 = arith.constant 0 : index
      %18 = vector.load %arg5[%c1, %c0_16] : memref<16x128xf32, #tpu.memory_space<vmem>>, vector<1x32xf32>
      %19 = vector.broadcast %18 : vector<1x32xf32> to vector<16x32xf32>
      %20 = arith.addf %17, %19 : vector<16x32xf32>
      %cst_17 = arith.constant 0.000000e+00 : f32
      %21 = vector.broadcast %cst_17 : f32 to vector<16x32xf32>
      %22 = arith.maximumf %20, %21 : vector<16x32xf32>
      %c0_18 = arith.constant 0 : index
      %c128 = arith.constant 128 : index
      %23 = vector.load %arg4[%c0_18, %c128] : memref<32x256xf32, #tpu.memory_space<vmem>>, vector<32x128xf32>
      %cst_19 = arith.constant dense<0.000000e+00> : vector<16x128xf32>
      %24 = tpu.matmul %22, %23, %cst_19 {dimension_numbers = #tpu.dot_dimension_numbers<[1], [0], [0], [1], [0, 0, 1, 1], [], []>} : vector<16x32xf32>, vector<32x128xf32>, vector<16x128xf32> -> vector<16x128xf32>
      %c2 = arith.constant 2 : index
      %c0_20 = arith.constant 0 : index
      %25 = vector.load %arg5[%c2, %c0_20] : memref<16x128xf32, #tpu.memory_space<vmem>>, vector<1x128xf32>
      %26 = vector.broadcast %25 : vector<1x128xf32> to vector<16x128xf32>
      %27 = arith.addf %24, %26 : vector<16x128xf32>
      %c0_21 = arith.constant 0 : index
      %c0_22 = arith.constant 0 : index
      %28 = vector.load %arg7[%c0_21, %c0_22] : memref<16x128xf32, #tpu.memory_space<vmem>>, vector<16x128xf32>
      tpu.vector_store %arg7[%c0_21, %c0_22], %27 {strides = array<i32>} : memref<16x128xf32, #tpu.memory_space<vmem>>, vector<16x128xf32>,
      %29 = tpu.iota {dimensions = array<i32: 0>} : vector<16x128xi32>
      %c2_i32 = arith.constant 2 : i32
      %30 = vector.broadcast %c2_i32 : i32 to vector<16x128xi32>
      %31 = arith.cmpi slt, %29, %30 : vector<16x128xi32>
      %32 = arith.extui %31 : vector<16x128xi1> to vector<16x128xi32>
      %33 = arith.sitofp %32 : vector<16x128xi32> to vector<16x128xf32>
      %34 = arith.mulf %27, %33 : vector<16x128xf32>
      %cst_23 = arith.constant dense<0.000000e+00> : vector<128xf32>
      %35 = vector.multi_reduction <add>, %34, %cst_23 [0] : vector<16x128xf32> to vector<128xf32>
      %36 = vector.shape_cast %35 : vector<128xf32> to vector<1x128xf32>
      %cst_24 = arith.constant 5.000000e-01 : f32
      %37 = vector.broadcast %cst_24 : f32 to vector<1x128xf32>
      %38 = arith.mulf %36, %37 : vector<1x128xf32>
      %c0_25 = arith.constant 0 : index
      %c32 = arith.constant 32 : index
      %39 = vector.load %arg8[%c0_25, %c32] : memref<16x256xf32, #tpu.memory_space<vmem>>, vector<16x32xf32>
      %c3 = arith.constant 3 : index
      %c0_26 = arith.constant 0 : index
      %40 = vector.load %arg5[%c3, %c0_26] : memref<16x128xf32, #tpu.memory_space<vmem>>, vector<1x32xf32>
      %41 = vector.broadcast %40 : vector<1x32xf32> to vector<16x32xf32>
      %42 = arith.addf %39, %41 : vector<16x32xf32>
      %43 = vector.extract_strided_slice %38 {offsets = [0, 0], sizes = [1, 1], strides = [1, 1]} : vector<1x128xf32> to vector<1x1xf32>
      %c0_27 = arith.constant 0 : index
      %c64 = arith.constant 64 : index
      %44 = vector.load %arg8[%c0_27, %c64] : memref<16x256xf32, #tpu.memory_space<vmem>>, vector<16x32xf32>
      %c5 = arith.constant 5 : index
      %c0_28 = arith.constant 0 : index
      %45 = vector.load %arg5[%c5, %c0_28] : memref<16x128xf32, #tpu.memory_space<vmem>>, vector<1x32xf32>
      %46 = vector.broadcast %45 : vector<1x32xf32> to vector<16x32xf32>
      %47 = arith.addf %44, %46 : vector<16x32xf32>
      %48 = vector.broadcast %43 : vector<1x1xf32> to vector<16x32xf32>
      %49 = arith.mulf %48, %47 : vector<16x32xf32>
      %50 = arith.addf %42, %49 : vector<16x32xf32>
      %51 = vector.extract_strided_slice %38 {offsets = [0, 1], sizes = [1, 1], strides = [1, 1]} : vector<1x128xf32> to vector<1x1xf32>
      %c0_29 = arith.constant 0 : index
      %c96 = arith.constant 96 : index
      %52 = vector.load %arg8[%c0_29, %c96] : memref<16x256xf32, #tpu.memory_space<vmem>>, vector<16x32xf32>
      %c6 = arith.constant 6 : index
      %c0_30 = arith.constant 0 : index
      %53 = vector.load %arg5[%c6, %c0_30] : memref<16x128xf32, #tpu.memory_space<vmem>>, vector<1x32xf32>
      %54 = vector.broadcast %53 : vector<1x32xf32> to vector<16x32xf32>
      %55 = arith.addf %52, %54 : vector<16x32xf32>
      %56 = vector.broadcast %51 : vector<1x1xf32> to vector<16x32xf32>
      %57 = arith.mulf %56, %55 : vector<16x32xf32>
      %58 = arith.addf %50, %57 : vector<16x32xf32>
      %59 = vector.extract_strided_slice %38 {offsets = [0, 2], sizes = [1, 1], strides = [1, 1]} : vector<1x128xf32> to vector<1x1xf32>
      %c0_31 = arith.constant 0 : index
      %c128_32 = arith.constant 128 : index
      %60 = vector.load %arg8[%c0_31, %c128_32] : memref<16x256xf32, #tpu.memory_space<vmem>>, vector<16x32xf32>
      %c7 = arith.constant 7 : index
      %c0_33 = arith.constant 0 : index
      %61 = vector.load %arg5[%c7, %c0_33] : memref<16x128xf32, #tpu.memory_space<vmem>>, vector<1x32xf32>
      %62 = vector.broadcast %61 : vector<1x32xf32> to vector<16x32xf32>
      %63 = arith.addf %60, %62 : vector<16x32xf32>
      %64 = vector.broadcast %59 : vector<1x1xf32> to vector<16x32xf32>
      %65 = arith.mulf %64, %63 : vector<16x32xf32>
      %66 = arith.addf %58, %65 : vector<16x32xf32>
      %67 = vector.extract_strided_slice %38 {offsets = [0, 3], sizes = [1, 1], strides = [1, 1]} : vector<1x128xf32> to vector<1x1xf32>
      %c0_34 = arith.constant 0 : index
      %c160 = arith.constant 160 : index
      %68 = vector.load %arg8[%c0_34, %c160] : memref<16x256xf32, #tpu.memory_space<vmem>>, vector<16x32xf32>
      %c8 = arith.constant 8 : index
      %c0_35 = arith.constant 0 : index
      %69 = vector.load %arg5[%c8, %c0_35] : memref<16x128xf32, #tpu.memory_space<vmem>>, vector<1x32xf32>
      %70 = vector.broadcast %69 : vector<1x32xf32> to vector<16x32xf32>
      %71 = arith.addf %68, %70 : vector<16x32xf32>
      %72 = vector.broadcast %67 : vector<1x1xf32> to vector<16x32xf32>
      %73 = arith.mulf %72, %71 : vector<16x32xf32>
      %74 = arith.addf %66, %73 : vector<16x32xf32>
      %cst_36 = arith.constant 0.000000e+00 : f32
      %75 = vector.broadcast %cst_36 : f32 to vector<16x32xf32>
      %76 = arith.maximumf %74, %75 : vector<16x32xf32>
      %77 = arith.truncf %76 : vector<16x32xf32> to vector<16x32xbf16>
      %c0_37 = arith.constant 0 : index
      %c0_38 = arith.constant 0 : index
      %78 = vector.load %arg3[%c0_37, %c0_38] : memref<32x128xbf16, #tpu.memory_space<vmem>>, vector<32x128xbf16>
      %cst_39 = arith.constant dense<0.000000e+00> : vector<16x128xf32>
      %79 = tpu.matmul %77, %78, %cst_39 {dimension_numbers = #tpu.dot_dimension_numbers<[1], [0], [0], [1], [0, 0, 1, 1], [], []>} : vector<16x32xbf16>, vector<32x128xbf16>, vector<16x128xf32> -> vector<16x128xf32>
      %80 = vector.extract_strided_slice %79 {offsets = [0, 0], sizes = [16, 10], strides = [1, 1]} : vector<16x128xf32> to vector<16x10xf32>
      %c4 = arith.constant 4 : index
      %c0_40 = arith.constant 0 : index
      %81 = vector.load %arg5[%c4, %c0_40] : memref<16x128xf32, #tpu.memory_space<vmem>>, vector<1x10xf32>
      %82 = vector.broadcast %81 : vector<1x10xf32> to vector<16x10xf32>
      %83 = arith.addf %80, %82 : vector<16x10xf32>
      %84 = vector.extract_strided_slice %38 {offsets = [0, 0], sizes = [1, 1], strides = [1, 1]} : vector<1x128xf32> to vector<1x1xf32>
      %85 = vector.extract_strided_slice %79 {offsets = [0, 10], sizes = [16, 10], strides = [1, 1]} : vector<16x128xf32> to vector<16x10xf32>
      %c9 = arith.constant 9 : index
      %c0_41 = arith.constant 0 : index
      %86 = vector.load %arg5[%c9, %c0_41] : memref<16x128xf32, #tpu.memory_space<vmem>>, vector<1x10xf32>
      %87 = vector.broadcast %86 : vector<1x10xf32> to vector<16x10xf32>
      %88 = arith.addf %85, %87 : vector<16x10xf32>
      %89 = vector.broadcast %84 : vector<1x1xf32> to vector<16x10xf32>
      %90 = arith.mulf %89, %88 : vector<16x10xf32>
      %91 = arith.addf %83, %90 : vector<16x10xf32>
      %92 = vector.extract_strided_slice %38 {offsets = [0, 1], sizes = [1, 1], strides = [1, 1]} : vector<1x128xf32> to vector<1x1xf32>
      %93 = vector.extract_strided_slice %79 {offsets = [0, 20], sizes = [16, 10], strides = [1, 1]} : vector<16x128xf32> to vector<16x10xf32>
      %c10 = arith.constant 10 : index
      %c0_42 = arith.constant 0 : index
      %94 = vector.load %arg5[%c10, %c0_42] : memref<16x128xf32, #tpu.memory_space<vmem>>, vector<1x10xf32>
      %95 = vector.broadcast %94 : vector<1x10xf32> to vector<16x10xf32>
      %96 = arith.addf %93, %95 : vector<16x10xf32>
      %97 = vector.broadcast %92 : vector<1x1xf32> to vector<16x10xf32>
      %98 = arith.mulf %97, %96 : vector<16x10xf32>
      %99 = arith.addf %91, %98 : vector<16x10xf32>
      %100 = vector.extract_strided_slice %38 {offsets = [0, 2], sizes = [1, 1], strides = [1, 1]} : vector<1x128xf32> to vector<1x1xf32>
      %101 = vector.extract_strided_slice %79 {offsets = [0, 30], sizes = [16, 10], strides = [1, 1]} : vector<16x128xf32> to vector<16x10xf32>
      %c11 = arith.constant 11 : index
      %c0_43 = arith.constant 0 : index
      %102 = vector.load %arg5[%c11, %c0_43] : memref<16x128xf32, #tpu.memory_space<vmem>>, vector<1x10xf32>
      %103 = vector.broadcast %102 : vector<1x10xf32> to vector<16x10xf32>
      %104 = arith.addf %101, %103 : vector<16x10xf32>
      %105 = vector.broadcast %100 : vector<1x1xf32> to vector<16x10xf32>
      %106 = arith.mulf %105, %104 : vector<16x10xf32>
      %107 = arith.addf %99, %106 : vector<16x10xf32>
      %108 = vector.extract_strided_slice %38 {offsets = [0, 3], sizes = [1, 1], strides = [1, 1]} : vector<1x128xf32> to vector<1x1xf32>
      %109 = vector.extract_strided_slice %79 {offsets = [0, 40], sizes = [16, 10], strides = [1, 1]} : vector<16x128xf32> to vector<16x10xf32>
      %c12 = arith.constant 12 : index
      %c0_44 = arith.constant 0 : index
      %110 = vector.load %arg5[%c12, %c0_44] : memref<16x128xf32, #tpu.memory_space<vmem>>, vector<1x10xf32>
      %111 = vector.broadcast %110 : vector<1x10xf32> to vector<16x10xf32>
      %112 = arith.addf %109, %111 : vector<16x10xf32>
      %113 = vector.broadcast %108 : vector<1x1xf32> to vector<16x10xf32>
      %114 = arith.mulf %113, %112 : vector<16x10xf32>
      %115 = arith.addf %107, %114 : vector<16x10xf32>
      %c0_45 = arith.constant 0 : index
      %c0_46 = arith.constant 0 : index
      %116 = vector.load %arg6[%c0_45, %c0_46] : memref<16x128xf32, #tpu.memory_space<vmem>>, vector<16x10xf32>
      tpu.vector_store %arg6[%c0_45, %c0_46], %115 {strides = array<i32>} : memref<16x128xf32, #tpu.memory_space<vmem>>, vector<16x10xf32>,
    } else {
    }
    return
  }
  func.func @transform_0(%arg0: i32) -> (i32, i32) {
    %c0_i32 = arith.constant 0 : i32
    %c0_i32_0 = arith.constant 0 : i32
    return %c0_i32, %arg0 : i32, i32
  }
  func.func @transform_1(%arg0: i32) -> (i32, i32) {
    %c0_i32 = arith.constant 0 : i32
    %c0_i32_0 = arith.constant 0 : i32
    return %arg0, %c0_i32 : i32, i32
  }
  func.func @transform_2(%arg0: i32) -> (i32, i32) {
    %c0_i32 = arith.constant 0 : i32
    %c0_i32_0 = arith.constant 0 : i32
    %c0_i32_1 = arith.constant 0 : i32
    return %c0_i32, %c0_i32_0 : i32, i32
  }
  func.func @transform_3(%arg0: i32) -> (i32, i32) {
    %c0_i32 = arith.constant 0 : i32
    %c0_i32_0 = arith.constant 0 : i32
    %c0_i32_1 = arith.constant 0 : i32
    return %c0_i32, %c0_i32_0 : i32, i32
  }
  func.func @transform_4(%arg0: i32) -> (i32, i32) {
    %c0_i32 = arith.constant 0 : i32
    %c0_i32_0 = arith.constant 0 : i32
    %c0_i32_1 = arith.constant 0 : i32
    return %c0_i32, %c0_i32_0 : i32, i32
  }
  func.func @transform_5(%arg0: i32) -> (i32, i32) {
    %c0_i32 = arith.constant 0 : i32
    %c0_i32_0 = arith.constant 0 : i32
    %c0_i32_1 = arith.constant 0 : i32
    return %c0_i32, %c0_i32_0 : i32, i32
  }
  func.func @transform_6(%arg0: i32) -> (i32, i32) {
    %c0_i32 = arith.constant 0 : i32
    %c0_i32_0 = arith.constant 0 : i32
    %c0_i32_1 = arith.constant 0 : i32
    return %c0_i32, %c0_i32_0 : i32, i32
  }
}

</mosaic_0001>

<bundles_post_ra>
// kernel: tpu_custom_call.1
= control target key start
LH: loop header
LB: loop body
LE: loop exit
PB: predicated region body
PF: predicated region fallthrough
CT: control target
= control target key end

     0   :  { %s2268_s0 = inlined_call_operand.hbm [shape: bf16[16,1024], index: 0, kind: input, shape index: {}]   ;;  %s2269_s1 = inlined_call_operand.hbm [shape: bf16[1024,256], index: 1, kind: input, shape index: {}]   ;;  %s2270_s2 = inlined_call_operand.hbm [shape: bf16[32,128], index: 2, kind: input, shape index: {}]   ;;  %s2271_s3 = inlined_call_operand.hbm [shape: f32[32,256], index: 3, kind: input, shape index: {}]   ;;  %s2272_s4 = inlined_call_operand.hbm [shape: f32[16,128], index: 4, kind: input, shape index: {}]   ;;  %s2273_s5 = inlined_call_operand.hbm [shape: f32[16,128], index: 5, kind: output, shape index: {0}]   ;;  %s2274_s6 = inlined_call_operand.hbm [shape: f32[16,128], index: 6, kind: output, shape index: {1}]  }
   0x1   :  { %2279 = sst [smem:[#allocation22_spill]] %s2270_s2 }
   0x2   :  { %12 = vsyncpa [#allocation4], 0 }
   0x3   :  { %14 = vsyncpa [#allocation4 + $0x1], 0 }
   0x4   :  { %15 = vsyncpa [#allocation7], 0 }
   0x5   :  { %17 = vsyncpa [#allocation7 + $0x1], 0 }
   0x6   :  { %18 = vsyncpa [#allocation10], 0 }
   0x7   :  { %19 = vsyncpa [#allocation5], 0 }
   0x8   :  { %20 = vsyncpa [#allocation14], 0  ;;  %s1882_s21 = smov 0   ;;  %s1884_s22 = smov 0  }
   0x9   :  { %s1886_s23 = smov 0   ;;  %s1888_s24 = smov 0  }
   0xa LB: > { %s1901_s25 = sadd.s32 4294967295, %s1811_s24   ;;  %s1904_s26 = sadd.s32 1, %s1811_s24   ;;  %s1811_s24 = sphi %s1888_s24, %s2300_s24   ;;  %s1807_s23 = sphi %s1886_s23, %s2299_s23   ;;  %s1803_s22 = sphi %s1884_s22, %s2298_s22   ;;  %s1799_s21 = sphi %s1882_s21, %s2297_s21  }
   0xb   : > { %s30_s27 = ssub.s32 %s1811_s24, %s1904_s26  ;;  %s33_s28 = sadd.s32 1, %s1807_s23 }
   0xc   : > { %p31_p0 = scmp.eq.s32.totalorder %s30_s27, 0  ;;  %p40_p1 = scmp.ne.s32.totalorder %s1807_s23, %s1803_s22 }
   0xd   : > { %p41_p2 = scmp.eq.s32.totalorder %s1811_s24, 0  ;;  %p46_p3 = scmp.ne.s32.totalorder %s1803_s22, %s1799_s21 }
   0xe   : > { %s1914_s29 = scalar_select %p31_p0, %s1807_s23, %s33_s28  }
   0xf   : > { %p1916_p4 = por %p41_p2, %p40_p1  ;;  %p2275_p5 = scmp.eq.s32.totalorder %s1901_s25, 0 }
  0x10   : > { %2280 = sst [smem:[#allocation21_spill]] %s1914_s29  ;;  %p1243_p6 = scmp.ge.s32.totalorder %s1811_s24, 1 }
  0x11   : > { %p188_p7 = scmp.lt.s32.totalorder %s1811_s24, 5  ;;  %p1925_p8 = por %p2275_p5, %p46_p3 }
  0x12   : > { %s1813_s9 = smov [#allocation8]   ;;  %p1432_p13 = scmp.lt.s32.totalorder %s1811_s24, 4 }
  0x13   : > { %s2282_s7 = scalar_select %p1925_p8, 1, 0 }
  0x14   : > { %p1930_p10 = pnand %p1243_p6, %p188_p7  ;;  %s200_s10 = sshll.u32 %s1813_s9, 4  ;;  %s201_s10 = int_to_ptr.vmem [resolvable:$true] %s200_s10 }
  0x15   : > { %p1945_p0 = pnand %p1432_p13, %p1916_p4  ;;  %s2286_s2 = sld [smem:[#allocation22_spill]] }
  0x16   : > { %s2283_s8 = scalar_select %p1930_p10, 1, 0 }
  0x17   : > { %p1412_p11 = pneg %p1930_p10 }
  0x18   : > { %s2285_s12 = scalar_select %p1945_p0, 1, 0 }
  0x19   : > { %p1938_p12 = pnand %p1412_p11, %p2275_p5 }
  0x1b   : > { %s1561_s15 = scalar_lea.hbm %s2286_s2, 256  ;;  %p1957_p2 = pneg %p1938_p12 }
  0x1c   : > { %p1562_p1 = scmp.ne.s32.totalorder %s2286_s2, %s1561_s15  ;;  %p1568_p6 = scmp.lt.u32.totalorder %s1561_s15, %s2286_s2 }
  0x1e   : > { %p1564_p3 = pnand %p1957_p2, %p1562_p1 }
  0x20   : > { %p1565_p4 = pneg %p1564_p3 }
  0x22   : > { %p1570_p7 = pnand %p1568_p6, %p1565_p4 }
  0x24   : > { %1573 = shalt.err (!%p1570_p7)
}
  0x25   : > { %s1574_s21 = scalar_lea.vmem %s201_s10, 256  ;;  %p1582_p5 = scmp.lt.s32.totalorder %s201_s10, %s201_s10 }
  0x26   : > { %p1575_p11 = scmp.ne.s32.totalorder %s201_s10, %s1574_s21  ;;  %p1583_p8 = scmp.lt.s32.totalorder %s1574_s21, %s1574_s21 }
  0x28   : > { %p1577_p13 = pnand %p1575_p11, %p1957_p2  ;;  %p1584_p10 = por %p1583_p8, %p1582_p5 }
  0x2a   : > { %p1578_p9 = pneg %p1577_p13 }
  0x2c   : > { %p1585_p0 = pnand %p1584_p10, %p1578_p9 }
  0x2e   : > { %1588 = shalt.err (!%p1585_p0)
}
  0x2f   : > { %s1814_s27 = smov 64   ;;  %s1815_s28 = smov 4  }
  0x30   : > { %1415 = dma.hbm_to_vmem [thread:$0]  (!%p1938_p12), %s2286_s2, 256, %s201_s10, [#allocation7], %s1814_s27, %s1814_s27, %s1815_s28  }
  0x31   : > { %s1816_s13 = smov [#allocation9]   ;;  %s1589_s17 = scalar_lea.hbm %s2271_s3, 1024 }
  0x32   : > { %s213_s14 = sshll.u32 %s1816_s13, 4  ;;  %p1590_p5 = scmp.ne.s32.totalorder %s2271_s3, %s1589_s17  ;;  %s214_s14 = int_to_ptr.vmem [resolvable:$true] %s213_s14 }
  0x33   : > { %p1596_p10 = scmp.lt.u32.totalorder %s1589_s17, %s2271_s3 }
  0x34   : > { %p1592_p8 = pnand %p1590_p5, %p1957_p2 }
  0x36   : > { %p1593_p9 = pneg %p1592_p8 }
  0x38   : > { %p1598_p0 = pnand %p1596_p10, %p1593_p9 }
  0x3a   : > { %1601 = shalt.err (!%p1598_p0)
}
  0x3b   : > { %s1602_s10 = scalar_lea.vmem %s214_s14, 1024  ;;  %p1610_p6 = scmp.lt.s32.totalorder %s214_s14, %s214_s14 }
  0x3c   : > { %p1603_p1 = scmp.ne.s32.totalorder %s214_s14, %s1602_s10  ;;  %p1611_p7 = scmp.lt.s32.totalorder %s1602_s10, %s1602_s10 }
  0x3e   : > { %p1605_p3 = pnand %p1603_p1, %p1957_p2  ;;  %p1612_p11 = por %p1611_p7, %p1610_p6 }
  0x40   : > { %p1606_p4 = pneg %p1605_p3 }
  0x42   : > { %p1613_p13 = pnand %p1612_p11, %p1606_p4 }
  0x44   : > { %1616 = shalt.err (!%p1613_p13)
}
  0x45   : > { %s1817_s27 = smov 256   ;;  %s1818_s28 = smov 16  }
  0x46   : > { %1418 = dma.hbm_to_vmem [thread:$0]  (!%p1938_p12), %s2271_s3, 1024, %s214_s14, [#allocation10], %s1817_s27, %s1817_s27, %s1818_s28  }
  0x47   : > { %s1819_s9 = smov [#allocation11]   ;;  %s1992_s15 = sand.u32 1, %s1807_s23  }
  0x48   : > { %s226_s13 = sshll.u32 %s1819_s9, 4  ;;  %s1617_s19 = scalar_lea.hbm %s2272_s4, 256  ;;  %s227_s13 = int_to_ptr.vmem [resolvable:$true] %s226_s13 }
  0x49   : > { %p1618_p5 = scmp.ne.s32.totalorder %s2272_s4, %s1617_s19  ;;  %p1624_p10 = scmp.lt.u32.totalorder %s1617_s19, %s2272_s4 }
  0x4b   : > { %p1620_p8 = pnand %p1618_p5, %p1957_p2 }
  0x4d   : > { %p1621_p9 = pneg %p1620_p8 }
  0x4f   : > { %p1626_p0 = pnand %p1624_p10, %p1621_p9 }
  0x51   : > { %1629 = shalt.err (!%p1626_p0)
}
  0x52   : > { %s1630_s14 = scalar_lea.vmem %s227_s13, 256  ;;  %p1638_p6 = scmp.lt.s32.totalorder %s227_s13, %s227_s13 }
  0x53   : > { %p1631_p1 = scmp.ne.s32.totalorder %s227_s13, %s1630_s14  ;;  %p1639_p7 = scmp.lt.s32.totalorder %s1630_s14, %s1630_s14 }
  0x55   : > { %p1633_p3 = pnand %p1631_p1, %p1957_p2  ;;  %p1640_p11 = por %p1639_p7, %p1638_p6 }
  0x57   : > { %p1634_p4 = pneg %p1633_p3 }
  0x59   : > { %p1641_p13 = pnand %p1640_p11, %p1634_p4 }
  0x5b   : > { %1644 = shalt.err (!%p1641_p13)
}
  0x5c   : > { %s1820_s27 = smov 128   ;;  %s1821_s2 = smov 8  }
  0x5d   : > { %1421 = dma.hbm_to_vmem [thread:$0]  (!%p1938_p12), %s2272_s4, 256, %s227_s13, [#allocation10], %s1820_s27, %s1820_s27, %s1821_s2  }
  0x5e   : > { %s1248_s29 = sshll.u32 %s1992_s15, 4  ;;  %s1324_s30 = sshll.u32 %s1811_s24, 7 }
  0x5f   : > { %s2020_s17 = scalar_lea.hbm %s2268_s0, %s1324_s30  ;;  %s244_s19 = scalar_lea.vmem [#allocation3], %s1248_s29 }
  0x60   : > { %s251_s11 = sshll.u32 %s244_s19, 4  ;;  %s241_s20 = scalar_lea.sflag [#allocation4], %s1992_s15  ;;  %s2022_s11 = int_to_ptr.vmem [resolvable:$true] %s251_s11 }
  0x61   : > { %s1645_s21 = scalar_lea.hbm %s2020_s17, 256  ;;  %p2288_p5 = scmp.ne.s32.totalorder %s2285_s12, 0 }
  0x62   : > { %p1646_p2 = scmp.ne.s32.totalorder %s2020_s17, %s1645_s21  ;;  %s1650_s14 = scalar_lea.hbm %s2268_s0, 1024 }
  0x63   : > { %p1647_p12 = pneg %p2288_p5  ;;  %p1651_p10 = scmp.lt.u32.totalorder %s2020_s17, %s2268_s0 }
  0x64   : > { %p1652_p0 = scmp.lt.u32.totalorder %s1650_s14, %s1645_s21  ;;  %p1654_p3 = scmp.lt.u32.totalorder %s1645_s21, %s2020_s17 }
  0x65   : > { %p1648_p8 = pnand %p1647_p12, %p1646_p2 }
  0x66   : > { %p1653_p1 = por %p1652_p0, %p1651_p10 }
  0x67   : > { %p1649_p9 = pneg %p1648_p8 }
  0x68   : > { %p1655_p4 = por %p1654_p3, %p1653_p1 }
  0x6a   : > { %p1656_p6 = pnand %p1655_p4, %p1649_p9 }
  0x6c   : > { %1659 = shalt.err (!%p1656_p6)
}
  0x6d   : > { %s1660_s29 = scalar_lea.vmem %s2022_s11, 256  ;;  %s1822_s30 = smov [#allocation3]  }
  0x6e   : > { %p1661_p7 = scmp.ne.s32.totalorder %s2022_s11, %s1660_s29  ;;  %s1665_s9 = sshll.u32 %s1822_s30, 4  ;;  %s1666_s9 = int_to_ptr.vmem [resolvable:$false] %s1665_s9 }
  0x6f   : > { %s1667_s16 = scalar_lea.vmem %s1666_s9, 512  ;;  %p1668_p2 = scmp.lt.s32.totalorder %s2022_s11, %s1666_s9 }
  0x70   : > { %p1663_p11 = pnand %p1661_p7, %p1647_p12  ;;  %p1669_p8 = scmp.lt.s32.totalorder %s1667_s16, %s1660_s29 }
  0x72   : > { %p1664_p13 = pneg %p1663_p11  ;;  %p1670_p10 = por %p1669_p8, %p1668_p2 }
  0x74   : > { %p1671_p0 = pnand %p1670_p10, %p1664_p13 }
  0x76   : > { %1674 = shalt.err (!%p1671_p0)
}
  0x77   : > { %s1823_s19 = smov 512   ;;  %s261_s21 = sand.u32 1, %s1811_s24  }
  0x78   : > { %1425 = dma.hbm_to_vmem [thread:$0]  (!%p2288_p5), %s2020_s17, 256, %s2022_s11, %s241_s20, %s1823_s19, %s1820_s27, %s1821_s2  }
  0x79   : > { %s1251_s13 = sshll.u32 %s1992_s15, 8  ;;  %s1326_s10 = sshll.u32 %s1811_s24, 12 }
  0x7a   : > { %s265_s14 = scalar_lea.vmem [#allocation6], %s1251_s13  ;;  %s2060_s30 = scalar_lea.hbm %s2269_s1, %s1326_s10 }
  0x7b   : > { %s273_s18 = sshll.u32 %s265_s14, 4  ;;  %s2064_s9 = scalar_lea.sflag [#allocation7], %s261_s21  ;;  %s2062_s18 = int_to_ptr.vmem [resolvable:$true] %s273_s18 }
  0x7c   : > { %s1675_s16 = scalar_lea.hbm %s2060_s30, 4096  ;;  %s1680_s17 = scalar_lea.hbm %s2269_s1, 16384 }
  0x7d   : > { %p1676_p9 = scmp.ne.s32.totalorder %s2060_s30, %s1675_s16  ;;  %p1681_p4 = scmp.lt.u32.totalorder %s2060_s30, %s2269_s1 }
  0x7e   : > { %p1682_p6 = scmp.lt.u32.totalorder %s1680_s17, %s1675_s16  ;;  %p1684_p11 = scmp.lt.u32.totalorder %s1675_s16, %s2060_s30 }
  0x7f   : > { %p1678_p1 = pnand %p1676_p9, %p1647_p12 }
  0x80   : > { %p1683_p7 = por %p1682_p6, %p1681_p4 }
  0x81   : > { %p1679_p3 = pneg %p1678_p1 }
  0x82   : > { %p1685_p13 = por %p1684_p11, %p1683_p7 }
  0x84   : > { %p1686_p2 = pnand %p1685_p13, %p1679_p3 }
  0x86   : > { %1689 = shalt.err (!%p1686_p2)
}
  0x87   : > { %s1690_s19 = scalar_lea.vmem %s2062_s18, 4096  ;;  %s1824_s21 = smov [#allocation6]  }
  0x88   : > { %p1691_p8 = scmp.ne.s32.totalorder %s2062_s18, %s1690_s19  ;;  %s1695_s13 = sshll.u32 %s1824_s21, 4  ;;  %s1696_s13 = int_to_ptr.vmem [resolvable:$false] %s1695_s13 }
  0x89   : > { %s1697_s10 = scalar_lea.vmem %s1696_s13, 8192  ;;  %p1698_p9 = scmp.lt.s32.totalorder %s2062_s18, %s1696_s13 }
  0x8a   : > { %p1693_p10 = pnand %p1691_p8, %p1647_p12  ;;  %p1699_p1 = scmp.lt.s32.totalorder %s1697_s10, %s1690_s19 }
  0x8c   : > { %p1694_p0 = pneg %p1693_p10  ;;  %p1700_p4 = por %p1699_p1, %p1698_p9 }
  0x8e   : > { %p1701_p6 = pnand %p1700_p4, %p1694_p0 }
  0x90   : > { %1704 = shalt.err (!%p1701_p6)
}
  0x91   : > { %1428 = dma.hbm_to_vmem [thread:$0]  (!%p2288_p5), %s2060_s30, 4096, %s2062_s18, %s2064_s9, %s1820_s27, %s1820_s27, %s1821_s2  }
  0x92   : > { %p2289_p12 = scmp.ne.s32.totalorder %s2283_s8, 0 }
  0x93   : > { %s287_s14 = sand.u32 (!%p2289_p12), 1, %s1803_s22   ;;  %p2290_p3 = scmp.ne.s32.totalorder (!%p2289_p12), %s2282_s7, 0 }
  0x94   : > { %285 = sbr.rel (%p2289_p12) target bundleno = 1693 (0x69d), region = 40  ;;  %s1256_s28 = sshll.u32 (!%p2289_p12), %s287_s14, 4 }
  0x95   : > { %s288_s29 = scalar_lea.sflag (!%p2289_p12), [#allocation4], %s287_s14  ;;  %s2096_s16 = scalar_lea.vmem (!%p2289_p12), [#allocation3], %s1256_s28 }
  0x9b   : > { %1774 = dma.done.wait (%p2290_p3), %s288_s29, 256  }
  0x9c   : > { %1776 = vsyncadd (%p2290_p3), %s288_s29, 4294967040  ;;  %s296_s12 = sand.u32 1, %s1901_s25   ;;  %s1257_s24 = sshll.u32 %s287_s14, 8 }
  0x9d   : > { %s297_s27 = scalar_lea.sflag [#allocation7], %s296_s12  ;;  %s2103_s2 = scalar_lea.vmem [#allocation6], %s1257_s24 }
  0x9e   : > { %1778 = dma.done.wait (%p2290_p3), %s297_s27, 4096  }
  0x9f   : > { %1780 = vsyncadd (%p2290_p3), %s297_s27, 4294963200  ;;  %p2291_p5 = scmp.eq.s32.totalorder %s1901_s25, 0 }
  0xa1   : > { %1782 = dma.done.wait (%p2291_p5), [#allocation7], 256   ;;  %p2292_p7 = pmov %p2291_p5 }
  0xa2   : > { %p2293_p11 = pmov %p2291_p5 }
  0xa3   : > { %1784 = vsyncadd (%p2292_p7), [#allocation7], 4294967040 }
  0xa4   : > { %1786 = dma.done.wait (%p2293_p11), [#allocation10], 1280   ;;  %p2294_p13 = pmov %p2291_p5 }
  0xa5   : > { %p2295_p2 = scmp.ne.s32.totalorder %s1901_s25, 0 }
  0xa6   : > { %1788 = vsyncadd (%p2294_p13), [#allocation10], 4294966016  ;;  %v1825_v0 = vmov (!%p2295_p2), 0.0  }
  0xa7   : > { %347 = sbr.rel (%p2295_p2) target bundleno = 174 (0xae), region = 64  ;;  %348 = vst [vmem:[#allocation2] sm:$0xff] (!%p2295_p2), %v1825_v0  ;;  %349 = vst [vmem:[#allocation2 + $0x8] sm:$0xff] (!%p2295_p2), %v1825_v0 }
  0xa8   : > { %350 = vst [vmem:[#allocation2 + $0x10] sm:$0xff] (!%p2295_p2), %v1825_v0  ;;  %351 = vst [vmem:[#allocation2 + $0x18] sm:$0xff] (!%p2295_p2), %v1825_v0 }
  0xae PF: > { %v1504_v1 = vld [vmem:[%s2103_s2 + $0x4] ss:$8 sps:$4 sm:$0xff]   ;;  %v1506_v2 = vld [vmem:[%s2103_s2] ss:$8 sps:$4 sm:$0xff]   ;;  %v1507_v3 = vld [vmem:[%s2103_s2 + $0x14] ss:$8 sps:$4 sm:$0xff]  }
  0xaf   : > { %560 = vmatprep.subr.bf16.mxu0 %v1504_v1  ;;  %v1509_v4 = vld [vmem:[%s2103_s2 + $0x10] ss:$8 sps:$4 sm:$0xff]   ;;  %v1510_v5 = vld [vmem:[%s2103_s2 + $0x24] ss:$8 sps:$4 sm:$0xff]   ;;  %v1512_v6 = vld [vmem:[%s2103_s2 + $0x20] ss:$8 sps:$4 sm:$0xff]  }
  0xb0   : > { %561 = vmatpush1.bf16.msra.mxu0 %v1506_v2  ;;  %v1513_v7 = vld [vmem:[%s2103_s2 + $0x34] ss:$8 sps:$4 sm:$0xff]   ;;  %v1515_v8 = vld [vmem:[%s2103_s2 + $0x30] ss:$8 sps:$4 sm:$0xff]   ;;  %v1516_v9 = vld [vmem:[%s2103_s2 + $0x44] ss:$8 sps:$4 sm:$0xff]  }
  0xb1   : > { %562 = vmatprep.subr.bf16.mxu0 %v1507_v3  ;;  %v1518_v10 = vld [vmem:[%s2103_s2 + $0x40] ss:$8 sps:$4 sm:$0xff]   ;;  %v1519_v11 = vld [vmem:[%s2103_s2 + $0x54] ss:$8 sps:$4 sm:$0xff]   ;;  %v1521_v12 = vld [vmem:[%s2103_s2 + $0x50] ss:$8 sps:$4 sm:$0xff]  }
  0xb2   : > { %v1522_v13 = vld [vmem:[%s2103_s2 + $0x64] ss:$8 sps:$4 sm:$0xff]   ;;  %v1524_v15 = vld [vmem:[%s2103_s2 + $0x60] ss:$8 sps:$4 sm:$0xff]   ;;  %v1525_v16 = vld [vmem:[%s2103_s2 + $0x74] ss:$8 sps:$4 sm:$0xff]  }
  0xb3   : > { %v1554_v14 = vld [vmem:[%s2096_s16 + $0x4] ss:$8 sps:$4 sm:$0xff]   ;;  %v1527_v17 = vld [vmem:[%s2103_s2 + $0x70] ss:$8 sps:$4 sm:$0xff]   ;;  %v1530_v19 = vld [vmem:[%s2103_s2 + $0x80] ss:$8 sps:$4 sm:$0xff]  }
  0xb4   : > { %563 = vmatpush1.bf16.msra.mxu0 %v1509_v4  ;;  %592 = vmatprep.mubr.bf16.mxu0 %v1554_v14  ;;  %v1528_v18 = vld [vmem:[%s2103_s2 + $0x84] ss:$8 sps:$4 sm:$0xff]   ;;  %v1531_v20 = vld [vmem:[%s2103_s2 + $0x94] ss:$8 sps:$4 sm:$0xff]   ;;  %v1533_v21 = vld [vmem:[%s2103_s2 + $0x90] ss:$8 sps:$4 sm:$0xff]  }
  0xb5   : > { %564 = vmatprep.subr.bf16.mxu0 %v1510_v5  ;;  %v1534_v22 = vld [vmem:[%s2103_s2 + $0xa4] ss:$8 sps:$4 sm:$0xff]   ;;  %v1536_v23 = vld [vmem:[%s2103_s2 + $0xa0] ss:$8 sps:$4 sm:$0xff]   ;;  %v1537_v24 = vld [vmem:[%s2103_s2 + $0xb4] ss:$8 sps:$4 sm:$0xff]  }
  0xb6   : > { %v1539_v25 = vld [vmem:[%s2103_s2 + $0xb0] ss:$8 sps:$4 sm:$0xff]   ;;  %v1540_v26 = vld [vmem:[%s2103_s2 + $0xc4] ss:$8 sps:$4 sm:$0xff]   ;;  %v1542_v27 = vld [vmem:[%s2103_s2 + $0xc0] ss:$8 sps:$4 sm:$0xff]  }
  0xb7   : > { %v1543_v28 = vld [vmem:[%s2103_s2 + $0xd4] ss:$8 sps:$4 sm:$0xff]   ;;  %v1545_v29 = vld [vmem:[%s2103_s2 + $0xd0] ss:$8 sps:$4 sm:$0xff]   ;;  %v1546_v30 = vld [vmem:[%s2103_s2 + $0xe4] ss:$8 sps:$4 sm:$0xff]  }
  0xb8   : > { %565 = vmatpush1.bf16.msra.mxu0 %v1512_v6  ;;  %v1548_v31 = vld [vmem:[%s2103_s2 + $0xe0] ss:$8 sps:$4 sm:$0xff]   ;;  %v1549_v32 = vld [vmem:[%s2103_s2 + $0xf4] ss:$8 sps:$4 sm:$0xff]   ;;  %v1551_v33 = vld [vmem:[%s2103_s2 + $0xf0] ss:$8 sps:$4 sm:$0xff]  }
  0xb9   : > { %566 = vmatprep.subr.bf16.mxu0 %v1513_v7  ;;  %v1552_v34 = vld [vmem:[%s2096_s16] ss:$8 sps:$4 sm:$0xff]   ;;  %p1296_p8 = scmp.ne.s32.totalorder %s1901_s25, 3 }
  0xba   : > { %v352_v35 = vld [vmem:[#allocation2] sm:$0xff]  ;;  %v353_v36 = vld [vmem:[#allocation2 + $0x8] sm:$0xff]  ;;  %v354_v38 = vld [vmem:[#allocation2 + $0x10] sm:$0xff]  ;;  %vm633_vm0 = vcmask (!%p1296_p8), 261120   ;;  %v1826_v7 = vmov (!%p1296_p8), 0.0   ;;  %s1827_s7 = smov (!%p1296_p8), 64  }
  0xbb   : > { %v355_v41 = vld [vmem:[#allocation2 + $0x18] sm:$0xff]  ;;  %v624_v47 = vld [vmem:[#allocation9] sm:$0xff] (!%p1296_p8)  ;;  %v625_v48 = vld [vmem:[#allocation9 + $0x10] sm:$0xff] (!%p1296_p8)  ;;  %s1831_s8 = smov (!%p1296_p8), 96   ;;  %s1832_s18 = smov (!%p1296_p8), 32   ;;  %vm1834_vm2 = vmmov (!%p1296_p8), 0  }
  0xbc   : > { %567 = vmatpush1.bf16.msra.mxu0 %v1515_v8  ;;  %v626_v49 = vld [vmem:[#allocation9 + $0x20] sm:$0xff] (!%p1296_p8)  ;;  %v1372_v50 = vpack.c.bf16 (!%p1296_p8), %v625_v48, %v624_v47  ;;  %v627_v51 = vld [vmem:[#allocation9 + $0x30] sm:$0xff] (!%p1296_p8)  ;;  %v717_v55 = vld [vmem:[#allocation9 + $0x8] sm:$0xff] (!%p1296_p8)  ;;  %s1835_s30 = smov (!%p1296_p8), 10   ;;  %s1836_s9 = smov (!%p1296_p8), 30   ;;  %vm1105_vm3 = vcmask (!%p1296_p8), 80896  }
  0xbd   : > { %568 = vmatprep.subr.bf16.mxu0 %v1516_v9  ;;  %v1376_v53 = vpack.c.bf16 (!%p1296_p8), %v627_v51, %v626_v49  ;;  %v1297_v54 = vld [vmem:[#allocation11] ss:$0 sm:$0xff] (!%p1296_p8)  ;;  %v718_v56 = vld [vmem:[#allocation9 + $0x18] sm:$0xff] (!%p1296_p8)  ;;  %v719_v61 = vld [vmem:[#allocation9 + $0x28] sm:$0xff] (!%p1296_p8)  ;;  %v1828_v9 = vmov (!%p1296_p8), 0   ;;  %s1837_s15 = smov (!%p1296_p8), 20  }
  0xbe   : > { %1373 = vmatprep.subr.bf16.mxu1 (!%p1296_p8), %v1372_v50  ;;  %v1380_v59 = vpack.c.bf16 (!%p1296_p8), %v718_v56, %v717_v55  ;;  %v720_v62 = vld [vmem:[#allocation9 + $0x38] sm:$0xff] (!%p1296_p8)  ;;  %v1298_v0 = vld [vmem:[#allocation11 + $0x1] ss:$0 sm:$0xff] (!%p1296_p8)  ;;  %v1306_v8 = vld [vmem:[#allocation11 + $0x5] ss:$0 sm:$0xff] (!%p1296_p8)  ;;  %1555 = vset.pattern.permute.xlu0 (!%p1296_p8), %v1828_v9  ;;  %s1838_s17 = smov (!%p1296_p8), 40  }
  0xbf   : > { %1375 = vmatpush3.bf16.msra.mxu1 (!%p1296_p8), %v1372_v50  ;;  %v1384_v63 = vpack.c.bf16 (!%p1296_p8), %v720_v62, %v719_v61  ;;  %847 = vrot.lane.b32.xlu1 (!%p1296_p8), %v1306_v8, %s1827_s7  ;;  %v1316_v8 = vld [vmem:[#allocation11 + $0xb] ss:$0 sm:$0xff] (!%p1296_p8)  ;;  %s1839_s11 = smov (!%p1296_p8), 118   ;;  %s1840_s20 = smov (!%p1296_p8), 108  }
  0xc0   : > { %569 = vmatpush1.bf16.msra.mxu0 %v1518_v10  ;;  %1377 = vmatprep.subr.bf16.mxu1 (!%p1296_p8), %v1376_v53  ;;  %v1829_v10 = vmov (!%p1296_p8), 2   ;;  %s1841_s19 = smov (!%p1296_p8), 98   ;;  %s1842_s21 = smov (!%p1296_p8), 88  }
  0xc1   : > { %570 = vmatprep.subr.bf16.mxu0 %v1519_v11  ;;  %1557 = vset.pattern.permute.xlu1 (!%p1296_p8), %v1829_v10  ;;  %v809_v11 = vlaneseq (!%p1296_p8) }
  0xc3   : > { %1379 = vmatpush3.bf16.msra.mxu1 (!%p1296_p8), %v1376_v53  ;;  %v1559_v53 = vld [vmem:[#allocation8] sm:$0xff] (!%p1296_p8)  }
  0xc4   : > { %571 = vmatpush1.bf16.msra.mxu0 %v1521_v12  ;;  %1381 = vmatprep.subr.bf16.mxu1 (!%p1296_p8), %v1380_v59  ;;  %v810_v12 = vshrl.u32 (!%p1296_p8), %v809_v11, 7 }
  0xc5   : > { %572 = vmatprep.subr.bf16.mxu0 %v1522_v13  ;;  %v1301_v13 = vld [vmem:[#allocation11 + $0x2] ss:$0 sm:$0xff] (!%p1296_p8) }
  0xc6   : > { %vm812_vm1 = vcmp.lt.s32.totalorder (!%p1296_p8), %v810_v12, 2 }
  0xc8   : > { %573 = vmatpush1.bf16.msra.mxu0 %v1524_v15 }
  0xc9   : > { %574 = vmatprep.subr.bf16.mxu0 %v1525_v16 }
  0xcc   : > { %575 = vmatpush1.bf16.msra.mxu0 %v1527_v17  ;;  %v1304_v17 = vsel (!%p1296_p8), %vm812_vm1, 1.0, %v1826_v7 }
  0xcd   : > { %576 = vmatprep.subr.bf16.mxu0 %v1528_v18 }
  0xd0   : > { %577 = vmatpush1.bf16.msra.mxu0 %v1530_v19 }
  0xd1   : > { %578 = vmatprep.subr.bf16.mxu0 %v1531_v20 }
  0xd4   : > { %579 = vmatpush1.bf16.msra.mxu0 %v1533_v21 }
  0xd5   : > { %580 = vmatprep.subr.bf16.mxu0 %v1534_v22 }
  0xd8   : > { %581 = vmatpush1.bf16.msra.mxu0 %v1536_v23 }
  0xd9   : > { %582 = vmatprep.subr.bf16.mxu0 %v1537_v24 }
  0xdc   : > { %583 = vmatpush1.bf16.msra.mxu0 %v1539_v25 }
  0xdd   : > { %584 = vmatprep.subr.bf16.mxu0 %v1540_v26 }
  0xe0   : > { %585 = vmatpush1.bf16.msra.mxu0 %v1542_v27 }
  0xe1   : > { %586 = vmatprep.subr.bf16.mxu0 %v1543_v28 }
  0xe4   : > { %587 = vmatpush1.bf16.msra.mxu0 %v1545_v29  ;;  %v1307_v29 = vld [vmem:[#allocation11 + $0x6] ss:$0 sm:$0xff] (!%p1296_p8) }
  0xe5   : > { %588 = vmatprep.subr.bf16.mxu0 %v1546_v30  ;;  %v1830_v30 = vmov (!%p1296_p8), 1  }
  0xe8   : > { %589 = vmatpush1.bf16.msra.mxu0 %v1548_v31  ;;  %v1305_v31 = vld [vmem:[#allocation11 + $0x3] ss:$0 sm:$0xff] (!%p1296_p8) }
  0xe9   : > { %590 = vmatprep.subr.bf16.mxu0 %v1549_v32  ;;  %v1833_v32 = vmov (!%p1296_p8), 3  }
  0xec   : > { %591 = vmatpush1.bf16.msra.mxu0 %v1551_v33  ;;  %v1309_v33 = vld [vmem:[#allocation11 + $0x8] ss:$0 sm:$0xff] (!%p1296_p8) }
  0xed   : > { %1364 = vmatprep.subr.bf16.mxu0 (!%p1296_p8), %v1826_v7 }
  0xef   : > { %593 = vmatmul.mubr.bf16.vlgmr.msra.gmra.mrb[0].mxu0 %v1552_v34 }
  0xf0   : > { %1365 = vmatpush3.bf16.msra.mxu0 (!%p1296_p8), %v1559_v53  ;;  %1368 = vmatprep.mubr.msk.bf16.mxu0 (!%p1296_p8), %vm1834_vm2, %v1826_v7 }
  0xf1   : > { %1366 = vmatprep.subr.bf16.mxu0 (!%p1296_p8), %v1826_v7 }
 0x131   : > { %v848_v34 = vpop.permute.xlu1 (!%p1296_p8), %847 }
 0x1c2   : > { %v594_v37 = vpop.f32.mrb[0].mxu0  ;;  %614 = sbr.rel (%p1296_p8) target bundleno = 1642 (0x66a), region = 68 }
 0x1c3   : > { %v603_v39 = vadd.f32 %v594_v37, %v352_v35  ;;  %v596_v40 = vpop.f32.mrb[1].mxu0 }
 0x1c4   : > { %v604_v42 = vadd.f32 %v596_v40, %v353_v36  ;;  %v598_v43 = vpop.f32.mrb[2].mxu0 }
 0x1c5   : > { %607 = vst [vmem:[#allocation2] sm:$0xff] %v603_v39  ;;  %v605_v44 = vadd.f32 %v598_v43, %v354_v38  ;;  %v600_v45 = vpop.f32.mrb[3].mxu0 }
 0x1c6   : > { %608 = vst [vmem:[#allocation2 + $0x8] sm:$0xff] %v604_v42  ;;  %v606_v46 = vadd.f32 %v600_v45, %v355_v41 }
 0x1c7   : > { %609 = vst [vmem:[#allocation2 + $0x10] sm:$0xff] %v605_v44  ;;  %v1308_v44 = vld [vmem:[#allocation11 + $0x7] ss:$0 sm:$0xff] (!%p1296_p8) }
 0x1c8   : > { %610 = vst [vmem:[#allocation2 + $0x18] sm:$0xff] %v606_v46 }
 0x1cc   : > { %v2154_v52 = vld [vmem:[#allocation2] sm:$0xff] }
 0x1cd   : > { %v622_v57 = vadd.f32 %v1297_v54, %v2154_v52  ;;  %v850_v35 = vadd.f32 %v848_v34, %v2154_v52  ;;  %v896_v42 = vld [vmem:[#allocation2 + $0x8] sm:$0xff] }
 0x1ce   : > { %v2157_v58 = vld [vmem:[#allocation2 + $0x10] sm:$0xff]  ;;  %v903_v50 = vadd.f32 %v1308_v44, %v896_v42 }
 0x1cf   : > { %1350 = vmatprep.mubr.msk.f32.mxu1 %vm633_vm0, %v622_v57  ;;  %v623_v60 = vadd.f32 %v1297_v54, %v2157_v58  ;;  %v851_v36 = vadd.f32 %v848_v34, %v2157_v58  ;;  %v897_v43 = vld [vmem:[#allocation2 + $0x18] sm:$0xff]  ;;  %v1560_v54 = vld [vmem:[#allocation8 + $0x8] sm:$0xff]  }
 0x1d0   : > { %v904_v51 = vadd.f32 %v1308_v44, %v897_v43  ;;  %1367 = vmatpush3.bf16.msra.mxu0 %v1560_v54 }
 0x1d1   : > { %1351 = vmatmul.mubr.msk.f32.vlgmr.msra.gmra.mrb[0].mxu1 %vm633_vm0, %v623_v60 }
 0x1d2   : > { %1383 = vmatpush3.bf16.msra.mxu1 %v1380_v59 }
 0x1d3   : > { %1385 = vmatprep.subr.bf16.mxu1 %v1384_v63 }
 0x1d6   : > { %1387 = vmatpush3.bf16.msra.mxu1 %v1384_v63 }
 0x2a4   : > { %v1352_v1 = vpop.f32.mrb[0].mxu1 }
 0x2a5   : > { %v712_v2 = vadd.f32 %v1352_v1, %v1298_v0  ;;  %v706_v3 = vpop.f32.mrb[1].mxu1 }
 0x2a6   : > { %v707_v4 = vadd.f32 %v1298_v0, %v706_v3  ;;  %v1314_v3 = vld [vmem:[#allocation11 + $0x9] ss:$0 sm:$0xff] }
 0x2a7   : > { %v716_v6 = vmax.f32 %v712_v2, 0.0 }
 0x2a8   : > { %v715_v5 = vmax.f32 %v707_v4, 0.0 }
 0x2aa   : > { %1361 = vmatprep.mubr.msk.f32.mxu1 %vm633_vm0, %v715_v5 }
 0x2ab   : > { %1362 = vmatmul.mubr.msk.f32.vlgmr.msra.gmra.mrb[2].mxu1 %vm633_vm0, %v716_v6 }
 0x37e   : > { %v1363_v14 = vpop.f32.mrb[2].mxu1 }
 0x37f   : > { %v804_v15 = vadd.f32 %v1363_v14, %v1301_v13  ;;  %v798_v16 = vpop.f32.mrb[3].mxu1 }
 0x380   : > { %v799_v18 = vadd.f32 %v1301_v13, %v798_v16 }
 0x381   : > { %808 = vst [vmem:[#allocation13 + $0x8] sm:$0xff] %v804_v15  ;;  %v819_v19 = vmul.f32 0.0, %v804_v15 }
 0x382   : > { %807 = vst [vmem:[#allocation13] sm:$0xff] %v799_v18  ;;  %v818_v20 = vmul.f32 %v1304_v17, %v799_v18 }
 0x384   : > { %v820_v21 = vadd.f32 %v819_v19, %v818_v20  ;;  %v1315_v20 = vld [vmem:[#allocation11 + $0xa] ss:$0 sm:$0xff] }
 0x386   : > { %v821_v22 = vrot.slane %v820_v21, 4 }
 0x388   : > { %v822_v23 = vadd.f32 %v821_v22, %v820_v21  ;;  %v1317_v21 = vld [vmem:[#allocation11 + $0xc] ss:$0 sm:$0xff] }
 0x38a   : > { %v823_v24 = vrot.slane %v822_v23, 2 }
 0x38c   : > { %v824_v25 = vadd.f32 %v823_v24, %v822_v23 }
 0x38e   : > { %v825_v26 = vrot.slane %v824_v25, 1 }
 0x390   : > { %v826_v27 = vadd.f32 %v825_v26, %v824_v25 }
 0x392   : > { %v827_v28 = vmul.f32 0.5, %v826_v27 }
 0x394   : > { %906 = vperm.xlu1 %1557, %v827_v28   ;;  %854 = vperm.xlu0 %1555, %v827_v28  }
 0x398   : > { %1556 = vset.pattern.permute.xlu0 %v1830_v30  ;;  %875 = vrot.lane.b32.xlu1 %v1307_v29, %s1831_s8 }
 0x399   : > { %881 = vperm.xlu0 %1556, %v827_v28  }
 0x39c   : > { %836 = vrot.lane.b32.xlu1 %v1305_v31, %s1832_s18 }
 0x39d   : > { %1558 = vset.pattern.permute.xlu0 %v1833_v32 }
 0x39e   : > { %933 = vperm.xlu0 %1558, %v827_v28  }
 0x3a0   : > { %927 = vrot.lane.b32.xlu1 %v1309_v33, %s1832_s18 }
 0x413   : > { %v2172_v37 = vpop.permute.xlu1 %906  ;;  %v2174_v38 = vpop.permute.xlu0 %854 }
 0x414   : > { %v858_v39 = vmul.f32 %v2174_v38, %v851_v36  ;;  %v857_v40 = vmul.f32 %v2174_v38, %v850_v35  ;;  %v909_v55 = vmul.f32 %v2172_v37, %v903_v50  ;;  %v910_v56 = vmul.f32 %v2172_v37, %v904_v51 }
 0x416   : > { %863 = vrot.lane.b32.xlu0 %v858_v39, %s1831_s8  ;;  %861 = vrot.lane.b32.xlu1 %v857_v40, %s1831_s8 }
 0x417   : > { %v876_v41 = vpop.permute.xlu1 %875 }
 0x418   : > { %v878_v45 = vadd.f32 %v876_v41, %v2154_v52  ;;  %v879_v46 = vadd.f32 %v876_v41, %v2157_v58  ;;  %v2182_v47 = vpop.permute.xlu0 %881 }
 0x41a   : > { %v885_v48 = vmul.f32 %v2182_v47, %v879_v46  ;;  %v884_v49 = vmul.f32 %v2182_v47, %v878_v45 }
 0x41b   : > { %v837_v57 = vpop.permute.xlu1 %836 }
 0x41c   : > { %890 = vrot.lane.b32.xlu0 %v885_v48, %s1827_s7  ;;  %888 = vrot.lane.b32.xlu1 %v884_v49, %s1827_s7  ;;  %v839_v63 = vadd.f32 %v837_v57, %v2154_v52  ;;  %v840_v0 = vadd.f32 %v837_v57, %v2157_v58 }
 0x41d   : > { %v2194_v59 = vpop.permute.xlu0 %933 }
 0x41f   : > { %v928_v60 = vpop.permute.xlu1 %927 }
 0x420   : > { %913 = vrot.lane.b32.xlu0 %v909_v55, %s1832_s18  ;;  %915 = vrot.lane.b32.xlu1 %v910_v56, %s1832_s18  ;;  %v930_v4 = vadd.f32 %v928_v60, %v896_v42  ;;  %v931_v5 = vadd.f32 %v928_v60, %v897_v43 }
 0x422   : > { %v936_v13 = vmul.f32 %v2194_v59, %v930_v4  ;;  %v937_v52 = vmul.f32 %v2194_v59, %v931_v5 }
 0x424   : > { %1019 = vrot.lane.b32.xlu1 %v1314_v3, %s1835_s30 }
 0x428   : > { %1065 = vrot.lane.b32.xlu1 %v1316_v8, %s1836_s9 }
 0x488   : > { %v862_v61 = vpop.permute.xlu1 %861  ;;  %v864_v62 = vpop.permute.xlu0 %863 }
 0x489   : > { %v867_v6 = vadd.f32 %v862_v61, %v839_v63  ;;  %v868_v7 = vadd.f32 %v864_v62, %v840_v0 }
 0x48e   : > { %v889_v1 = vpop.permute.xlu1 %888  ;;  %v891_v2 = vpop.permute.xlu0 %890 }
 0x48f   : > { %v894_v9 = vadd.f32 %v889_v1, %v867_v6  ;;  %v895_v10 = vadd.f32 %v891_v2, %v868_v7 }
 0x492   : > { %v916_v11 = vpop.permute.xlu1 %915  ;;  %v914_v12 = vpop.permute.xlu0 %913 }
 0x493   : > { %v920_v14 = vadd.f32 %v916_v11, %v895_v10  ;;  %v919_v58 = vadd.f32 %v914_v12, %v894_v9 }
 0x495   : > { %v939_v15 = vadd.f32 %v937_v52, %v920_v14  ;;  %v938_v16 = vadd.f32 %v936_v13, %v919_v58 }
 0x496   : > { %v1020_v23 = vpop.permute.xlu1 %1019 }
 0x497   : > { %v941_v17 = vmax.f32 %v939_v15, 0.0  ;;  %v940_v18 = vmax.f32 %v938_v16, 0.0 }
 0x499   : > { %v942_v19 = vpack.c.bf16 %v941_v17, %v940_v18 }
 0x49a   : > { %v1066_v33 = vpop.permute.xlu1 %1065 }
 0x49b   : > { %948 = vrot.lane.b32.xlu0 %v942_v19, %s1831_s8 }
 0x49f   : > { %1042 = vrot.lane.b32.xlu0 %v1315_v20, %s1837_s15 }
 0x4a3   : > { %1088 = vrot.lane.b32.xlu0 %v1317_v21, %s1838_s17 }
 0x50d   : > { %v949_v22 = vpop.permute.xlu0 %948 }
 0x50e   : > { %1369 = vmatmul.mubr.msk.bf16.vlgmr.msra.gmra.mrb[0].mxu0 %vm633_vm0, %v949_v22 }
 0x511   : > { %v1043_v27 = vpop.permute.xlu0 %1042 }
 0x515   : > { %v1089_v40 = vpop.permute.xlu0 %1088 }
 0x5e1   : > { %v999_v24 = vpop.f32.mrb[0].mxu0 }
 0x5e2   : > { %v1370_v25 = vpop.f32.mrb[1].mxu0  ;;  %v1022_v26 = vadd.f32 %v1020_v23, %v999_v24  ;;  %v1045_v32 = vadd.f32 %v1043_v27, %v999_v24  ;;  %v1068_v39 = vadd.f32 %v1066_v33, %v999_v24  ;;  %v1091_v43 = vadd.f32 %v1089_v40, %v999_v24 }
 0x5e3   : > { %v1002_v28 = vpop.f32.mrb[2].mxu0 }
 0x5e4   : > { %v1371_v29 = vpop.f32.mrb[3].mxu0  ;;  %v1024_v30 = vmul.f32 %v1022_v26, %v2174_v38  ;;  %v1023_v31 = vadd.f32 %v1020_v23, %v1002_v28  ;;  %v1046_v35 = vadd.f32 %v1043_v27, %v1002_v28  ;;  %v1047_v36 = vmul.f32 %v1045_v32, %v2182_v47 }
 0x5e5   : > { %v1069_v42 = vadd.f32 %v1066_v33, %v1002_v28  ;;  %v1070_v44 = vmul.f32 %v1068_v39, %v2172_v37  ;;  %v1093_v46 = vmul.f32 %v1091_v43, %v2194_v59 }
 0x5e6   : > { %1028 = vrot.lane.b32.xlu1 %v1024_v30, %s1839_s11  ;;  %v1025_v34 = vmul.f32 %v1023_v31, %v2174_v38  ;;  %v1048_v41 = vmul.f32 %v1046_v35, %v2182_v47  ;;  %v1092_v38 = vadd.f32 %v1089_v40, %v1002_v28  ;;  %v1313_v47 = vld [vmem:[#allocation11 + $0x4] ss:$0 sm:$0xff] }
 0x5e7   : > { %v1071_v45 = vmul.f32 %v1069_v42, %v2172_v37  ;;  %v1011_v53 = vadd.f32 %v1313_v47, %v999_v24  ;;  %v1012_v56 = vadd.f32 %v1313_v47, %v1002_v28 }
 0x5e8   : > { %1030 = vrot.lane.b32.xlu0 %v1025_v34, %s1839_s11  ;;  %v1094_v48 = vmul.f32 %v1092_v38, %v2194_v59 }
 0x5ea   : > { %1051 = vrot.lane.b32.xlu1 %v1047_v36, %s1840_s20 }
 0x5ec   : > { %1053 = vrot.lane.b32.xlu0 %v1048_v41, %s1840_s20 }
 0x5ee   : > { %1074 = vrot.lane.b32.xlu1 %v1070_v44, %s1841_s19 }
 0x5f0   : > { %1076 = vrot.lane.b32.xlu0 %v1071_v45, %s1841_s19 }
 0x5f2   : > { %1097 = vrot.lane.b32.xlu1 %v1093_v46, %s1842_s21 }
 0x5f4   : > { %1099 = vrot.lane.b32.xlu0 %v1094_v48, %s1842_s21 }
 0x658   : > { %v1029_v49 = vpop.permute.xlu1 %1028 }
 0x659   : > { %v1034_v55 = vadd.f32 %v1029_v49, %v1011_v53 }
 0x65a   : > { %v1031_v50 = vpop.permute.xlu0 %1030 }
 0x65b   : > { %v1035_v60 = vadd.f32 %v1031_v50, %v1012_v56 }
 0x65c   : > { %v1052_v51 = vpop.permute.xlu1 %1051 }
 0x65d   : > { %v1057_v37 = vadd.f32 %v1052_v51, %v1034_v55 }
 0x65e   : > { %v1054_v54 = vpop.permute.xlu0 %1053 }
 0x65f   : > { %v1058_v62 = vadd.f32 %v1054_v54, %v1035_v60 }
 0x660   : > { %v1075_v57 = vpop.permute.xlu1 %1074 }
 0x661   : > { %v1080_v63 = vadd.f32 %v1075_v57, %v1057_v37 }
 0x662   : > { %v1077_v61 = vpop.permute.xlu0 %1076 }
 0x663   : > { %v1081_v1 = vadd.f32 %v1077_v61, %v1058_v62 }
 0x664   : > { %v1098_v0 = vpop.permute.xlu1 %1097 }
 0x665   : > { %v1103_v2 = vadd.f32 %v1098_v0, %v1080_v63 }
 0x666   : > { %v1100_v59 = vpop.permute.xlu0 %1099 }
 0x667   : > { %1106 = vst.msk [vmem:[#allocation12] sm:$0xff] %vm1105_vm3, %v1103_v2  ;;  %v1104_v3 = vadd.f32 %v1100_v59, %v1081_v1 }
 0x669   : > { %1107 = vst.msk [vmem:[#allocation12 + $0x8] sm:$0xff] %vm1105_vm3, %v1104_v3 }
 0x66a PF: > { %p1436_p10 = scmp.eq.s32.totalorder %s1901_s25, 3  ;;  %s1843_s13 = smov [#allocation12]  }
 0x66b   : > { %s1114_s10 = sshll.u32 %s1843_s13, 4  ;;  %s1115_s10 = int_to_ptr.vmem [resolvable:$true] %s1114_s10 }
 0x66c   : > { %s1705_s14 = scalar_lea.vmem %s1115_s10, 256  ;;  %p1712_p4 = scmp.lt.s32.totalorder %s1115_s10, %s1115_s10 }
 0x66d   : > { %p1706_p0 = scmp.ne.s32.totalorder %s1115_s10, %s1705_s14  ;;  %p1713_p6 = scmp.lt.s32.totalorder %s1705_s14, %s1705_s14 }
 0x66f   : > { %p1707_p9 = pnand %p1706_p0, %p1436_p10  ;;  %p1714_p12 = por %p1713_p6, %p1712_p4 }
 0x671   : > { %p1708_p1 = pneg %p1707_p9 }
 0x673   : > { %p1715_p3 = pnand %p1714_p12, %p1708_p1 }
 0x675   : > { %1718 = shalt.err (!%p1715_p3)
}
 0x676   : > { %s1719_s16 = scalar_lea.hbm %s2273_s5, 256 }
 0x677   : > { %p1720_p5 = scmp.ne.s32.totalorder %s2273_s5, %s1719_s16  ;;  %p1725_p13 = scmp.lt.u32.totalorder %s1719_s16, %s2273_s5 }
 0x679   : > { %p1721_p7 = pnand %p1720_p5, %p1436_p10 }
 0x67b   : > { %p1722_p11 = pneg %p1721_p7 }
 0x67d   : > { %p1727_p2 = pnand %p1725_p13, %p1722_p11 }
 0x67f   : > { %1730 = shalt.err (!%p1727_p2)
}
 0x680   : > { %s1844_s7 = smov 128   ;;  %s1845_s8 = smov 8  }
 0x681   : > { %1405 = dma.vmem_to_hbm [thread:$0]  (%p1436_p10), %s1115_s10, 256, %s2273_s5, [#allocation5], %s1844_s7, %s1844_s7, %s1845_s8  }
 0x682   : > { %s1846_s9 = smov [#allocation13]  }
 0x683   : > { %s1127_s15 = sshll.u32 %s1846_s9, 4  ;;  %s1128_s15 = int_to_ptr.vmem [resolvable:$true] %s1127_s15 }
 0x684   : > { %s1731_s17 = scalar_lea.vmem %s1128_s15, 256  ;;  %p1738_p1 = scmp.lt.s32.totalorder %s1128_s15, %s1128_s15 }
 0x685   : > { %p1732_p8 = scmp.ne.s32.totalorder %s1128_s15, %s1731_s17  ;;  %p1739_p4 = scmp.lt.s32.totalorder %s1731_s17, %s1731_s17 }
 0x687   : > { %p1733_p0 = pnand %p1732_p8, %p1436_p10  ;;  %p1740_p6 = por %p1739_p4, %p1738_p1 }
 0x689   : > { %p1734_p9 = pneg %p1733_p0 }
 0x68b   : > { %p1741_p12 = pnand %p1740_p6, %p1734_p9 }
 0x68d   : > { %1744 = shalt.err (!%p1741_p12)
}
 0x68e   : > { %s1745_s19 = scalar_lea.hbm %s2274_s6, 256 }
 0x68f   : > { %p1746_p3 = scmp.ne.s32.totalorder %s2274_s6, %s1745_s19  ;;  %p1751_p11 = scmp.lt.u32.totalorder %s1745_s19, %s2274_s6 }
 0x691   : > { %p1747_p5 = pnand %p1746_p3, %p1436_p10 }
 0x693   : > { %p1748_p7 = pneg %p1747_p5 }
 0x695   : > { %p1753_p13 = pnand %p1751_p11, %p1748_p7 }
 0x697   : > { %1756 = shalt.err (!%p1753_p13)
}
 0x698   : > { %1407 = dma.vmem_to_hbm [thread:$0]  (%p1436_p10), %s1128_s15, 256, %s2274_s6, [#allocation14], %s1844_s7, %s1844_s7, %s1845_s8  }
 0x699   : > { %1790 = dma.done.wait (%p1436_p10), [#allocation5], 256  }
 0x69a   : > { %1792 = vsyncadd (%p1436_p10), [#allocation5], 4294967040 }
 0x69b   : > { %1794 = dma.done.wait (%p1436_p10), [#allocation14], 256  }
 0x69c   : > { %1796 = vsyncadd (%p1436_p10), [#allocation14], 4294967040 }
 0x69d PF: > { %s2296_s16 = sld [smem:[#allocation21_spill]]  ;;  %p23_p2 = scmp.ge.s32.totalorder %s1904_s26, 6  }
 0x69e   : > { %s2297_s21 = smov %s1803_s22  ;;  %s2298_s22 = smov %s1807_s23 }
 0x69f   : > { %s2300_s24 = smov %s1904_s26  ;;  %25 = sbr.rel (!%p23_p2) target bundleno = 10 (0xa), region = 118 }
 0x6a3   : > { %s2299_s23 = smov %s2296_s16 }
 0x6a6   :  { %1147 = vsyncpa [#allocation4], 1 }
 0x6a7   :  { %1149 = vsyncpa [#allocation4 + $0x1], 1 }
 0x6a8   :  { %1150 = vsyncpa [#allocation7], 1 }
 0x6a9   :  { %1152 = vsyncpa [#allocation7 + $0x1], 1 }
 0x6aa   :  { %1153 = vsyncpa [#allocation10], 1 }
 0x6ab   :  { %1154 = vsyncpa [#allocation5], 1 }
 0x6ac   :  { %1156 = vsyncpa [#allocation5 + $0x1], 1 }
 0x6ad   :  { %1157 = vsyncpa [#allocation14], 1 }

</bundles_post_ra>
